<compile_context>
chip_gen: v5e
topology: v5e:2x2
jax: 0.10.0
libtpu: 0.0.40
codegen_flags: <defaults>
</compile_context>

<pallas_src>
import functools

import numpy as np
import jax
import jax.numpy as jnp
from jax.experimental import pallas as pl
from jax.experimental.pallas import tpu as pltpu


# ---------------------------------------------------------------------------
# Exact linear operators for AdaptiveAvgPool2d and bilinear (align_corners=True)
# ---------------------------------------------------------------------------

def _adaptive_pool_matrix(in_size: int, out_size: int) -> np.ndarray:
    """P[i, h] such that pooled[i] = sum_h P[i, h] * x[h] (PyTorch adaptive avg)."""
    P = np.zeros((out_size, in_size), dtype=np.float32)
    for i in range(out_size):
        start = (i * in_size) // out_size
        end = -(-((i + 1) * in_size) // out_size)  # ceil
        P[i, start:end] = 1.0 / (end - start)
    return P


def _bilinear_matrix(out_size: int, in_size: int) -> np.ndarray:
    """U[i, j] such that up[i] = sum_j U[i, j] * y[j], align_corners=True."""
    U = np.zeros((out_size, in_size), dtype=np.float32)
    if in_size == 1:
        U[:, 0] = 1.0
        return U
    for i in range(out_size):
        src = 0.0 if out_size == 1 else i * (in_size - 1) / (out_size - 1)
        lo = int(np.floor(src))
        hi = min(lo + 1, in_size - 1)
        frac = src - lo
        U[i, lo] += 1.0 - frac
        U[i, hi] += frac
    return U


def _pick_tile(total: int, target: int) -> int:
    """Largest multiple-of-128 divisor of `total` that is <= target, else full."""
    best = None
    t = 128
    limit = min(total, target)
    while t <= limit:
        if total % t == 0:
            best = t
        t += 128
    return best if best is not None else total


def _vmem_budget_bytes(frac: float = 0.75, fallback: int = 48 * 1024 * 1024) -> int:
    """[R6] Per-generation VMEM budget (conservative fallback = fits v7x's 64 MiB)."""
    try:
        cap = int(pltpu.get_tpu_info().vmem_capacity_bytes)
    except Exception:
        return fallback
    return int(cap * frac)


# ---------------------------------------------------------------------------
# Phase A: adaptive-avg-pool (tiled HW reduction) + 1x1 conv + GroupNorm + ReLU
# ---------------------------------------------------------------------------

def _psp_pool_gn_kernel(x_ref, pT_ref, w_ref, m_ref, mask_ref, gamma_ref,
                        beta_ref, invc_ref, z_ref, acc_ref, *, tk: int, eps: float):
    k = pl.program_id(1)

    @pl.when(k == 0)
    def _init():
        acc_ref[...] = jnp.zeros_like(acc_ref)

    # [R2] P2^T is fully resident; slice the contraction tile out of it.
    start = k * tk
    if tk % 128 == 0:
        start = pl.multiple_of(start, 128)
    # [R1] cast the x tile to bf16 in-kernel (x stays native-dtype in HBM).
    x_bf = x_ref[0].astype(jnp.bfloat16)                           # (C_in, TK)
    acc_ref[...] += jnp.dot(x_bf, pT_ref[pl.ds(start, tk), :],
                            preferred_element_type=jnp.float32)    # (C_in, PP_PAD)

    @pl.when(k == pl.num_programs(1) - 1)
    def _finalize():
        pooled = acc_ref[...].astype(jnp.bfloat16)                 # (C_in, PP_PAD)
        # 1x1 conv, no bias (all levels stacked row-wise): bf16 MXU, f32 acc.
        y = jnp.dot(w_ref[...], pooled,
                    preferred_element_type=jnp.float32)            # (C_total, PP_PAD)

        # GroupNorm, in-layout.  [R8] lane-reduce first (XLU), then a tiny
        # block-diagonal group-mix matmul on (C_total, 1) columns.
        mask = mask_ref[...]                                       # (C_total, PP_PAD)
        ym = y * mask                                              # zero non-level lanes
        s = jnp.sum(ym, axis=-1, keepdims=True)                    # (C_total, 1)
        s2 = jnp.sum(ym * ym, axis=-1, keepdims=True)              # (C_total, 1)
        gs = jnp.dot(m_ref[...], s, preferred_element_type=jnp.float32)
        gs2 = jnp.dot(m_ref[...], s2, preferred_element_type=jnp.float32)
        mean = gs * invc_ref[...]                                  # divide by TRUE count
        ex2 = gs2 * invc_ref[...]
        var = jnp.maximum(ex2 - mean * mean, 0.0)
        inv_std = jax.lax.rsqrt(var + eps)

        z = (y - mean) * (inv_std * gamma_ref[...]) + beta_ref[...]
        z = jnp.maximum(z, 0.0) * mask                             # ReLU, zero pad lanes
        z_ref[0] = z.astype(z_ref.dtype)


# ---------------------------------------------------------------------------
# Phase B: bilinear upsample (align_corners=True) as a lane-dense matmul
# ---------------------------------------------------------------------------

def _psp_upsample_kernel(z_ref, uT_ref, o_ref):
    # (C_total, PP_PAD) @ (PP_PAD, THW); unused / padded rows of U2^T are zero.
    o_ref[0] = jnp.dot(z_ref[0], uT_ref[...],
                       preferred_element_type=jnp.float32).astype(o_ref.dtype)


# ---------------------------------------------------------------------------
# Fused multi-level wrapper ([R5]); single-level module is a special case.
# ---------------------------------------------------------------------------

def psp_pyramid_forward(x, levels, num_groups=32, eps=1e-5,
                        out_dtype=jnp.bfloat16,
                        pool_k_tile_target=2048, up_hw_tile_target=4096):
    """Fused PSP pyramid.

    x: (N, C_in, H, W) in its native float dtype (read once for ALL levels).
    levels: sequence of (conv_w, gamma, beta, pool_size); conv_w may be
            (C_out, C_in) or (C_out, C_in, 1, 1).
    Returns (N, sum(C_out_l), H, W) with per-level channel blocks concatenated
    in the given order (the PSPNet concat), dtype `out_dtype` ([R4] bf16 default).
    """
    N, C_in, H, W = x.shape
    HW = H * W

    # ----- static (shape-only) setup: operators + packed parameter slabs -----
    pool_sizes = [int(p) for (_, _, _, p) in levels]
    c_outs = [int(np.shape(w)[0]) for (w, _, _, _) in levels]
    pps = [p * p for p in pool_sizes]
    col_offs = np.concatenate([[0], np.cumsum(pps)]).astype(int)
    row_offs = np.concatenate([[0], np.cumsum(c_outs)]).astype(int)
    pp_total = int(col_offs[-1])
    C_total = int(row_offs[-1])
    PP_PAD = max(128, -(-pp_total // 128) * 128)       # lane-dense slab for all levels

    P2T = np.zeros((HW, PP_PAD), np.float32)
    U2T = np.zeros((PP_PAD, HW), np.float32)
    mask_np = np.zeros((C_total, PP_PAD), np.float32)  # which lanes belong to each row
    M_np = np.zeros((C_total, C_total), np.float32)    # same-level, same-group mixer
    invc_np = np.zeros((C_total, 1), np.float32)       # 1 / (cpg * p*p) per row
    for l, p in enumerate(pool_sizes):
        C_out = c_outs[l]
        assert C_out % num_groups == 0, "GroupNorm needs C_out % num_groups == 0"
        cpg = C_out // num_groups
        co, pp, ro = int(col_offs[l]), pps[l], int(row_offs[l])
        Ph, Pw = _adaptive_pool_matrix(H, p), _adaptive_pool_matrix(W, p)
        P2T[:, co:co + pp] = np.kron(Ph, Pw).T
        Uh, Uw = _bilinear_matrix(H, p), _bilinear_matrix(W, p)
        U2T[co:co + pp, :] = np.kron(Uh, Uw).T
        mask_np[ro:ro + C_out, co:co + pp] = 1.0
        M_np[ro:ro + C_out, ro:ro + C_out] = np.kron(
            np.eye(num_groups, dtype=np.float32), np.ones((cpg, cpg), np.float32))
        invc_np[ro:ro + C_out, 0] = 1.0 / (cpg * pp)

    # ----- device operands -----
    # [R1] no dtype cast of x in the wrapper; only a contiguity-preserving reshape.
    x_flat = jnp.asarray(x).reshape(N, C_in, HW)
    P2T_b = jnp.asarray(P2T, dtype=jnp.bfloat16)
    U2T_b = jnp.asarray(U2T, dtype=jnp.bfloat16)
    W_big = jnp.concatenate(
        [jnp.asarray(w).reshape(c, -1) for (w, _, _, _), c in zip(levels, c_outs)],
        axis=0).astype(jnp.bfloat16)
    assert W_big.shape == (C_total, C_in)
    gamma_big = jnp.concatenate(
        [jnp.asarray(g, dtype=jnp.float32).reshape(c, 1)
         for (_, g, _, _), c in zip(levels, c_outs)], axis=0)
    beta_big = jnp.concatenate(
        [jnp.asarray(b, dtype=jnp.float32).reshape(c, 1)
         for (_, _, b, _), c in zip(levels, c_outs)], axis=0)
    mask_j = jnp.asarray(mask_np)
    M_j = jnp.asarray(M_np)
    invc_j = jnp.asarray(invc_np)

    # ----- [R6] tile sizes derived from a per-generation VMEM budget -----
    vmem_budget = _vmem_budget_bytes()
    x_bytes = int(jnp.dtype(x_flat.dtype).itemsize)
    out_bytes = int(jnp.dtype(out_dtype).itemsize)

    resident_a = (2 * HW * PP_PAD * 2            # resident P2^T (double-buffer alloc)
                  + C_in * PP_PAD * 4            # f32 accumulator scratch
                  + 2 * C_total * C_in * 2       # conv weights
                  + 2 * C_total * C_total * 4    # group-mix
                  + 2 * C_total * PP_PAD * (4 + 2)  # mask + z output block
                  + (2 << 20))                   # slack for small operands
    avail_x = max(vmem_budget - resident_a, 4 << 20)
    tk_cap = max(128, avail_x // (2 * C_in * x_bytes))
    TK = _pick_tile(HW, min(pool_k_tile_target, tk_cap))

    resident_b = 2 * C_total * PP_PAD * 2 + (2 << 20)
    per_thw = 2 * (PP_PAD * 2 + C_total * out_bytes)
    thw_cap = max(128, max(vmem_budget - resident_b, 4 << 20) // per_thw)
    THW = _pick_tile(HW, min(up_hw_tile_target, thw_cap))       # [R9]

    # ---------------- Phase A: pool + conv + GroupNorm + ReLU ----------------
    kernel_a = functools.partial(_psp_pool_gn_kernel, tk=TK, eps=float(eps))
    z = pl.pallas_call(
        kernel_a,
        out_shape=jax.ShapeDtypeStruct((N, C_total, PP_PAD), jnp.bfloat16),
        grid_spec=pltpu.PrefetchScalarGridSpec(
            num_scalar_prefetch=0,
            grid=(N, HW // TK),
            in_specs=[
                pl.BlockSpec((1, C_in, TK), lambda b, k: (b, 0, k)),       # x (native)
                pl.BlockSpec((HW, PP_PAD), lambda b, k: (0, 0)),           # P2^T resident
                pl.BlockSpec((C_total, C_in), lambda b, k: (0, 0)),        # conv weights
                pl.BlockSpec((C_total, C_total), lambda b, k: (0, 0)),     # group mix
                pl.BlockSpec((C_total, PP_PAD), lambda b, k: (0, 0)),      # lane mask
                pl.BlockSpec((C_total, 1), lambda b, k: (0, 0)),           # gamma
                pl.BlockSpec((C_total, 1), lambda b, k: (0, 0)),           # beta
                pl.BlockSpec((C_total, 1), lambda b, k: (0, 0)),           # 1/count
            ],
            out_specs=pl.BlockSpec((1, C_total, PP_PAD), lambda b, k: (b, 0, 0)),
            scratch_shapes=[pltpu.VMEM((C_in, PP_PAD), jnp.float32)],
        ),
        compiler_params=pltpu.CompilerParams(
            dimension_semantics=("parallel", "arbitrary"),
            vmem_limit_bytes=vmem_budget),
    )(x_flat, P2T_b, W_big, M_j, mask_j, gamma_big, beta_big, invc_j)

    # ---------------- Phase B: bilinear upsample, lane-dense output tiles ----
    # [R3] grid = (HW//THW, N): batch innermost, so the U2^T block (0, j) is
    # constant across the inner sweep and is not re-streamed per batch.
    out_flat = pl.pallas_call(
        _psp_upsample_kernel,
        out_shape=jax.ShapeDtypeStruct((N, C_total, HW), out_dtype),
        grid_spec=pltpu.PrefetchScalarGridSpec(
            num_scalar_prefetch=0,
            grid=(HW // THW, N),
            in_specs=[
                pl.BlockSpec((1, C_total, PP_PAD), lambda j, b: (b, 0, 0)),  # z (tiny)
                pl.BlockSpec((PP_PAD, THW), lambda j, b: (0, j)),            # U2^T tile
            ],
            out_specs=pl.BlockSpec((1, C_total, THW), lambda j, b: (b, 0, j)),
        ),
        compiler_params=pltpu.CompilerParams(
            dimension_semantics=("parallel", "parallel"),
            vmem_limit_bytes=vmem_budget),
    )(z, U2T_b)

    return out_flat.reshape(N, C_total, H, W)


def psp_module_forward(x, conv_w, gamma, beta, pool_size, num_groups=32,
                       eps=1e-5, out_dtype=jnp.bfloat16,
                       pool_k_tile_target=2048, up_hw_tile_target=4096):
    """The original single-level _PSPModule forward: (N, C_in, H, W) -> (N, C_out, H, W)."""
    return psp_pyramid_forward(
        x, [(conv_w, gamma, beta, pool_size)], num_groups=num_groups, eps=eps,
        out_dtype=out_dtype, pool_k_tile_target=pool_k_tile_target,
        up_hw_tile_target=up_hw_tile_target)


# ---------------------------------------------------------------------------
# Pure-JAX f32 reference (same math, no Pallas) for a sanity check
# ---------------------------------------------------------------------------

def _reference(x, conv_w, gamma, beta, pool_size, num_groups=32, eps=1e-5):
    N, C_in, H, W = x.shape
    conv_w = jnp.asarray(conv_w).reshape(np.shape(conv_w)[0], -1)
    C_out = conv_w.shape[0]
    p = int(pool_size)
    Ph = jnp.asarray(_adaptive_pool_matrix(H, p))
    Pw = jnp.asarray(_adaptive_pool_matrix(W, p))
    Uh = jnp.asarray(_bilinear_matrix(H, p))
    Uw = jnp.asarray(_bilinear_matrix(W, p))

    pooled = jnp.einsum('ih,nchw,jw->ncij', Ph, x, Pw)
    y = jnp.einsum('oc,ncij->noij', conv_w, pooled)
    yg = y.reshape(N, num_groups, -1)
    mean = yg.mean(axis=-1, keepdims=True)
    var = ((yg - mean) ** 2).mean(axis=-1, keepdims=True)
    yn = ((yg - mean) * jax.lax.rsqrt(var + eps)).reshape(N, C_out, p, p)
    z = yn * gamma.reshape(1, C_out, 1, 1) + beta.reshape(1, C_out, 1, 1)
    z = jnp.maximum(z, 0.0)
    return jnp.einsum('hi,noij,wj->nohw', Uh, z, Uw)


if __name__ == "__main__":
    # GroupNorm(32, C_out) forces C_out to be a multiple of 32.
    N, C_in, H, W = 2, 8, 16, 16
    C_out, pool_size = 32, 4

    key = jax.random.PRNGKey(0)
    kx, kw, kg, kb = jax.random.split(key, 4)
    x = jax.random.normal(kx, (N, C_in, H, W), dtype=jnp.float32)
    conv_w = jax.random.normal(kw, (C_out, C_in), dtype=jnp.float32) / np.sqrt(C_in)
    gamma = 1.0 + 0.1 * jax.random.normal(kg, (C_out,), dtype=jnp.float32)
    beta = 0.1 * jax.random.normal(kb, (C_out,), dtype=jnp.float32)

    # Small tile targets so the test exercises the tiled HW reduction (multiple
    # k-steps in Phase A) and the tiled upsample output (multiple j-steps in B).
    out = psp_module_forward(x, conv_w, gamma, beta, pool_size,
                             pool_k_tile_target=128, up_hw_tile_target=128)
    out = jax.block_until_ready(out)
    ref = _reference(x, conv_w, gamma, beta, pool_size)
    # bf16 operators / output -> loosened tolerance vs the f32 reference.
    np.testing.assert_allclose(np.asarray(out.astype(jnp.float32)),
                               np.asarray(ref), rtol=5e-2, atol=5e-2)

    # Fused pyramid ([R5]): three levels share a single Phase-A read of x.
    kws = jax.random.split(jax.random.PRNGKey(1), 9)
    levels, refs = [], []
    for i, p in enumerate((1, 2, 3)):
        w_l = jax.random.normal(kws[3 * i], (C_out, C_in), jnp.float32) / np.sqrt(C_in)
        g_l = 1.0 + 0.1 * jax.random.normal(kws[3 * i + 1], (C_out,), jnp.float32)
        b_l = 0.1 * jax.random.normal(kws[3 * i + 2], (C_out,), jnp.float32)
        levels.append((w_l, g_l, b_l, p))
        refs.append(_reference(x, w_l, g_l, b_l, p))
    out_pyr = jax.block_until_ready(
        psp_pyramid_forward(x, levels, pool_k_tile_target=128, up_hw_tile_target=128))
    ref_pyr = jnp.concatenate(refs, axis=1)
    np.testing.assert_allclose(np.asarray(out_pyr.astype(jnp.float32)),
                               np.asarray(ref_pyr), rtol=5e-2, atol=5e-2)

    print("KERNEL_OK")
</pallas_src>

<mosaic_0001>
module attributes {stable_mosaic.version = 11 : i64} {
  func.func @_psp_pool_gn_kernel(%arg0: i32, %arg1: i32, %arg2: memref<1x8x128xf32, #tpu.memory_space<vmem>>, %arg3: memref<256x128xbf16, #tpu.memory_space<vmem>>, %arg4: memref<32x8xbf16, #tpu.memory_space<vmem>>, %arg5: memref<32x32xf32, #tpu.memory_space<vmem>>, %arg6: memref<32x128xf32, #tpu.memory_space<vmem>>, %arg7: memref<32x1xf32, #tpu.memory_space<vmem>>, %arg8: memref<32x1xf32, #tpu.memory_space<vmem>>, %arg9: memref<32x1xf32, #tpu.memory_space<vmem>>, %arg10: memref<1x32x128xbf16, #tpu.memory_space<vmem>>, %arg11: memref<8x128xf32, #tpu.memory_space<vmem>>) attributes {dimension_semantics = [#tpu.dimension_semantics<parallel>, #tpu.dimension_semantics<arbitrary>], iteration_bounds = array<i64: 2, 2>, scalar_prefetch = 0 : i64, scratch_operands = 1 : i64, tpu.core_type = #tpu.core_type<tc>, window_params = [{transform_indices = @transform_0, window_bounds = array<i64: 1, 8, 128>}, {pipeline_mode = #tpu.pipeline_mode<synchronous>, transform_indices = @transform_1, window_bounds = array<i64: 256, 128>}, {pipeline_mode = #tpu.pipeline_mode<synchronous>, transform_indices = @transform_2, window_bounds = array<i64: 32, 8>}, {pipeline_mode = #tpu.pipeline_mode<synchronous>, transform_indices = @transform_3, window_bounds = array<i64: 32, 32>}, {pipeline_mode = #tpu.pipeline_mode<synchronous>, transform_indices = @transform_4, window_bounds = array<i64: 32, 128>}, {pipeline_mode = #tpu.pipeline_mode<synchronous>, transform_indices = @transform_5, window_bounds = array<i64: 32, 1>}, {pipeline_mode = #tpu.pipeline_mode<synchronous>, transform_indices = @transform_6, window_bounds = array<i64: 32, 1>}, {pipeline_mode = #tpu.pipeline_mode<synchronous>, transform_indices = @transform_7, window_bounds = array<i64: 32, 1>}, {transform_indices = @transform_8, window_bounds = array<i64: 1, 32, 128>}]} {
    %c0_i32 = arith.constant 0 : i32
    %0 = arith.cmpi eq, %arg1, %c0_i32 : i32
    %1 = arith.extui %0 : i1 to i32
    %c0_i32_0 = arith.constant 0 : i32
    %2 = arith.cmpi ne, %1, %c0_i32_0 : i32
    scf.if %2 {
      %cst_9 = arith.constant 0.000000e+00 : f32
      %17 = vector.broadcast %cst_9 : f32 to vector<8x128xf32>
      %c0_10 = arith.constant 0 : index
      %c0_11 = arith.constant 0 : index
      %18 = vector.load %arg11[%c0_10, %c0_11] : memref<8x128xf32, #tpu.memory_space<vmem>>, vector<8x128xf32>
      tpu.vector_store %arg11[%c0_10, %c0_11], %17 {strides = array<i32>} : memref<8x128xf32, #tpu.memory_space<vmem>>, vector<8x128xf32>,
    } else {
    }
    %c128_i32 = arith.constant 128 : i32
    %3 = arith.muli %arg1, %c128_i32 : i32
    %4 = tpu.assume_multiple %3, 128 : i32
    %c0 = arith.constant 0 : index
    %c0_1 = arith.constant 0 : index
    %c0_2 = arith.constant 0 : index
    %5 = vector.load %arg2[%c0, %c0_1, %c0_2] : memref<1x8x128xf32, #tpu.memory_space<vmem>>, vector<1x8x128xf32>
    %6 = vector.shape_cast %5 : vector<1x8x128xf32> to vector<8x128xf32>
    %7 = arith.truncf %6 : vector<8x128xf32> to vector<8x128xbf16>
    %c0_3 = arith.constant 0 : index
    %c0_4 = arith.constant 0 : index
    %8 = vector.load %arg11[%c0_3, %c0_4] : memref<8x128xf32, #tpu.memory_space<vmem>>, vector<8x128xf32>
    %9 = arith.index_cast %4 : i32 to index
    %c0_5 = arith.constant 0 : index
    %10 = vector.load %arg3[%9, %c0_5] : memref<256x128xbf16, #tpu.memory_space<vmem>>, vector<128x128xbf16>
    %cst = arith.constant dense<0.000000e+00> : vector<8x128xf32>
    %11 = tpu.matmul %7, %10, %cst {dimension_numbers = #tpu.dot_dimension_numbers<[1], [0], [0], [1], [0, 0, 1, 1], [], []>} : vector<8x128xbf16>, vector<128x128xbf16>, vector<8x128xf32> -> vector<8x128xf32>
    %12 = arith.addf %8, %11 : vector<8x128xf32>
    %c0_6 = arith.constant 0 : index
    %c0_7 = arith.constant 0 : index
    %13 = vector.load %arg11[%c0_6, %c0_7] : memref<8x128xf32, #tpu.memory_space<vmem>>, vector<8x128xf32>
    tpu.vector_store %arg11[%c0_6, %c0_7], %12 {strides = array<i32>} : memref<8x128xf32, #tpu.memory_space<vmem>>, vector<8x128xf32>,
    %c1_i32 = arith.constant 1 : i32
    %14 = arith.cmpi eq, %arg1, %c1_i32 : i32
    %15 = arith.extui %14 : i1 to i32
    %c0_i32_8 = arith.constant 0 : i32
    %16 = arith.cmpi ne, %15, %c0_i32_8 : i32
    scf.if %16 {
      %c0_9 = arith.constant 0 : index
      %c0_10 = arith.constant 0 : index
      %17 = vector.load %arg11[%c0_9, %c0_10] : memref<8x128xf32, #tpu.memory_space<vmem>>, vector<8x128xf32>
      %18 = arith.truncf %17 : vector<8x128xf32> to vector<8x128xbf16>
      %c0_11 = arith.constant 0 : index
      %c0_12 = arith.constant 0 : index
      %19 = vector.load %arg4[%c0_11, %c0_12] : memref<32x8xbf16, #tpu.memory_space<vmem>>, vector<32x8xbf16>
      %cst_13 = arith.constant dense<0.000000e+00> : vector<32x128xf32>
      %20 = tpu.matmul %19, %18, %cst_13 {dimension_numbers = #tpu.dot_dimension_numbers<[1], [0], [0], [1], [0, 0, 1, 1], [], []>} : vector<32x8xbf16>, vector<8x128xbf16>, vector<32x128xf32> -> vector<32x128xf32>
      %c0_14 = arith.constant 0 : index
      %c0_15 = arith.constant 0 : index
      %21 = vector.load %arg6[%c0_14, %c0_15] : memref<32x128xf32, #tpu.memory_space<vmem>>, vector<32x128xf32>
      %22 = arith.mulf %20, %21 : vector<32x128xf32>
      %cst_16 = arith.constant dense<0.000000e+00> : vector<32xf32>
      %23 = vector.multi_reduction <add>, %22, %cst_16 [1] : vector<32x128xf32> to vector<32xf32>
      %24 = vector.shape_cast %23 : vector<32xf32> to vector<32x1xf32>
      %25 = arith.mulf %22, %22 : vector<32x128xf32>
      %cst_17 = arith.constant dense<0.000000e+00> : vector<32xf32>
      %26 = vector.multi_reduction <add>, %25, %cst_17 [1] : vector<32x128xf32> to vector<32xf32>
      %27 = vector.shape_cast %26 : vector<32xf32> to vector<32x1xf32>
      %c0_18 = arith.constant 0 : index
      %c0_19 = arith.constant 0 : index
      %28 = vector.load %arg5[%c0_18, %c0_19] : memref<32x32xf32, #tpu.memory_space<vmem>>, vector<32x32xf32>
      %cst_20 = arith.constant dense<0.000000e+00> : vector<32x1xf32>
      %29 = tpu.matmul %28, %24, %cst_20 {dimension_numbers = #tpu.dot_dimension_numbers<[1], [0], [0], [1], [0, 0, 1, 1], [], []>} : vector<32x32xf32>, vector<32x1xf32>, vector<32x1xf32> -> vector<32x1xf32>
      %c0_21 = arith.constant 0 : index
      %c0_22 = arith.constant 0 : index
      %30 = vector.load %arg5[%c0_21, %c0_22] : memref<32x32xf32, #tpu.memory_space<vmem>>, vector<32x32xf32>
      %cst_23 = arith.constant dense<0.000000e+00> : vector<32x1xf32>
      %31 = tpu.matmul %30, %27, %cst_23 {dimension_numbers = #tpu.dot_dimension_numbers<[1], [0], [0], [1], [0, 0, 1, 1], [], []>} : vector<32x32xf32>, vector<32x1xf32>, vector<32x1xf32> -> vector<32x1xf32>
      %c0_24 = arith.constant 0 : index
      %c0_25 = arith.constant 0 : index
      %32 = vector.load %arg9[%c0_24, %c0_25] : memref<32x1xf32, #tpu.memory_space<vmem>>, vector<32x1xf32>
      %33 = arith.mulf %29, %32 : vector<32x1xf32>
      %c0_26 = arith.constant 0 : index
      %c0_27 = arith.constant 0 : index
      %34 = vector.load %arg9[%c0_26, %c0_27] : memref<32x1xf32, #tpu.memory_space<vmem>>, vector<32x1xf32>
      %35 = arith.mulf %31, %34 : vector<32x1xf32>
      %36 = arith.mulf %33, %33 : vector<32x1xf32>
      %37 = arith.subf %35, %36 : vector<32x1xf32>
      %cst_28 = arith.constant 0.000000e+00 : f32
      %38 = vector.broadcast %cst_28 : f32 to vector<32x1xf32>
      %39 = arith.maximumf %37, %38 : vector<32x1xf32>
      %cst_29 = arith.constant 9.99999974E-6 : f32
      %40 = vector.broadcast %cst_29 : f32 to vector<32x1xf32>
      %41 = arith.addf %39, %40 : vector<32x1xf32>
      %42 = math.rsqrt %41 : vector<32x1xf32>
      %43 = vector.broadcast %33 : vector<32x1xf32> to vector<32x128xf32>
      %44 = arith.subf %20, %43 : vector<32x128xf32>
      %c0_30 = arith.constant 0 : index
      %c0_31 = arith.constant 0 : index
      %45 = vector.load %arg7[%c0_30, %c0_31] : memref<32x1xf32, #tpu.memory_space<vmem>>, vector<32x1xf32>
      %46 = arith.mulf %42, %45 : vector<32x1xf32>
      %47 = vector.broadcast %46 : vector<32x1xf32> to vector<32x128xf32>
      %48 = arith.mulf %44, %47 : vector<32x128xf32>
      %c0_32 = arith.constant 0 : index
      %c0_33 = arith.constant 0 : index
      %49 = vector.load %arg8[%c0_32, %c0_33] : memref<32x1xf32, #tpu.memory_space<vmem>>, vector<32x1xf32>
      %50 = vector.broadcast %49 : vector<32x1xf32> to vector<32x128xf32>
      %51 = arith.addf %48, %50 : vector<32x128xf32>
      %cst_34 = arith.constant 0.000000e+00 : f32
      %52 = vector.broadcast %cst_34 : f32 to vector<32x128xf32>
      %53 = arith.maximumf %51, %52 : vector<32x128xf32>
      %54 = arith.mulf %53, %21 : vector<32x128xf32>
      %55 = arith.truncf %54 : vector<32x128xf32> to vector<32x128xbf16>
      %c0_35 = arith.constant 0 : index
      %c0_36 = arith.constant 0 : index
      %c0_37 = arith.constant 0 : index
      %56 = vector.load %arg10[%c0_35, %c0_36, %c0_37] : memref<1x32x128xbf16, #tpu.memory_space<vmem>>, vector<1x32x128xbf16>
      %57 = vector.shape_cast %56 : vector<1x32x128xbf16> to vector<32x128xbf16>
      %58 = vector.shape_cast %55 : vector<32x128xbf16> to vector<1x32x128xbf16>
      tpu.vector_store %arg10[%c0_35, %c0_36, %c0_37], %58 {strides = array<i32>} : memref<1x32x128xbf16, #tpu.memory_space<vmem>>, vector<1x32x128xbf16>,
    } else {
    }
    return
  }
  func.func @transform_0(%arg0: i32, %arg1: i32) -> (i32, i32, i32) {
    %c0_i32 = arith.constant 0 : i32
    %c0_i32_0 = arith.constant 0 : i32
    return %arg0, %c0_i32, %arg1 : i32, i32, i32
  }
  func.func @transform_1(%arg0: i32, %arg1: i32) -> (i32, i32) {
    %c0_i32 = arith.constant 0 : i32
    %c0_i32_0 = arith.constant 0 : i32
    %c0_i32_1 = arith.constant 0 : i32
    return %c0_i32, %c0_i32_0 : i32, i32
  }
  func.func @transform_2(%arg0: i32, %arg1: i32) -> (i32, i32) {
    %c0_i32 = arith.constant 0 : i32
    %c0_i32_0 = arith.constant 0 : i32
    %c0_i32_1 = arith.constant 0 : i32
    return %c0_i32, %c0_i32_0 : i32, i32
  }
  func.func @transform_3(%arg0: i32, %arg1: i32) -> (i32, i32) {
    %c0_i32 = arith.constant 0 : i32
    %c0_i32_0 = arith.constant 0 : i32
    %c0_i32_1 = arith.constant 0 : i32
    return %c0_i32, %c0_i32_0 : i32, i32
  }
  func.func @transform_4(%arg0: i32, %arg1: i32) -> (i32, i32) {
    %c0_i32 = arith.constant 0 : i32
    %c0_i32_0 = arith.constant 0 : i32
    %c0_i32_1 = arith.constant 0 : i32
    return %c0_i32, %c0_i32_0 : i32, i32
  }
  func.func @transform_5(%arg0: i32, %arg1: i32) -> (i32, i32) {
    %c0_i32 = arith.constant 0 : i32
    %c0_i32_0 = arith.constant 0 : i32
    %c0_i32_1 = arith.constant 0 : i32
    return %c0_i32, %c0_i32_0 : i32, i32
  }
  func.func @transform_6(%arg0: i32, %arg1: i32) -> (i32, i32) {
    %c0_i32 = arith.constant 0 : i32
    %c0_i32_0 = arith.constant 0 : i32
    %c0_i32_1 = arith.constant 0 : i32
    return %c0_i32, %c0_i32_0 : i32, i32
  }
  func.func @transform_7(%arg0: i32, %arg1: i32) -> (i32, i32) {
    %c0_i32 = arith.constant 0 : i32
    %c0_i32_0 = arith.constant 0 : i32
    %c0_i32_1 = arith.constant 0 : i32
    return %c0_i32, %c0_i32_0 : i32, i32
  }
  func.func @transform_8(%arg0: i32, %arg1: i32) -> (i32, i32, i32) {
    %c0_i32 = arith.constant 0 : i32
    %c0_i32_0 = arith.constant 0 : i32
    %c0_i32_1 = arith.constant 0 : i32
    return %arg0, %c0_i32, %c0_i32_0 : i32, i32, i32
  }
}

</mosaic_0001>

<bundles_post_ra>
// kernel: tpu_custom_call.1
= control target key start
LH: loop header
LB: loop body
LE: loop exit
PB: predicated region body
PF: predicated region fallthrough
CT: control target
= control target key end

     0   :  { %s1495_s0 = inlined_call_operand.vmem [shape: f32[2,8,256], index: 0, kind: input, shape index: {}]   ;;  %s1496_s1 = inlined_call_operand.hbm [shape: bf16[256,128], index: 1, kind: input, shape index: {}]   ;;  %s1497_s2 = inlined_call_operand.vmem [shape: bf16[32,8], index: 2, kind: input, shape index: {}]   ;;  %s1498_s3 = inlined_call_operand.vmem [shape: f32[32,32], index: 3, kind: input, shape index: {}]   ;;  %s1499_s4 = inlined_call_operand.vmem [shape: f32[32,128], index: 4, kind: input, shape index: {}]   ;;  %s1500_s5 = inlined_call_operand.vmem [shape: f32[32,1], index: 5, kind: input, shape index: {}]   ;;  %s1501_s6 = inlined_call_operand.vmem [shape: f32[32,1], index: 6, kind: input, shape index: {}]   ;;  %s1502_s7 = inlined_call_operand.vmem [shape: f32[32,1], index: 7, kind: input, shape index: {}]   ;;  %s1503_s8 = inlined_call_operand.hbm [shape: bf16[2,32,128], index: 8, kind: output, shape index: {}]  }
   0x1   :  { %1508 = sst [smem:[#allocation13_spill]] %s1496_s1 }
   0x2   :  { %13 = vsyncpa [#allocation4], 0 }
   0x3   :  { %14 = vsyncpa [#allocation5], 0 }
   0x4   :  { %16 = vsyncpa [#allocation5 + $0x1], 0  ;;  %s1247_s27 = smov 0   ;;  %s1249_s28 = smov 0  }
   0x5   :  { %s1251_s29 = smov 0   ;;  %s1253_s30 = smov 0  }
   0x6   :  { %s1255_s9 = smov 0   ;;  %s1257_s10 = smov 0  }
   0x7   :  { %s1259_s11 = smov 0   ;;  %s1261_s12 = smov 0  }
   0x8 LB: > { %1509 = sst [smem:[#allocation9_spill]] %s1185_s10  ;;  %s867_s13 = sadd.s32 4294967295, %s1193_s12   ;;  %s1193_s12 = sphi %s1261_s12, %s22_s12   ;;  %s1189_s11 = sphi %s1259_s11, %s1521_s11   ;;  %s1185_s10 = sphi %s1257_s10, %s1520_s10   ;;  %s1181_s9 = sphi %s1255_s9, %s1519_s9   ;;  %s1177_s30 = sphi %s1253_s30, %s1518_s30   ;;  %s1173_s29 = sphi %s1251_s29, %s1524_s29   ;;  %s1169_s28 = sphi %s1249_s28, %s1523_s28   ;;  %s1165_s27 = sphi %s1247_s27, %s1522_s27  }
   0x9   : > { %1510 = sst [smem:[#allocation10_spill]] %s1189_s11  ;;  %s868_s14 = sadd.s32 4294967294, %s1193_s12  }
   0xa   : > { %s31_s15 = sadd.s32 1, %s1185_s10  ;;  %s34_s16 = sadd.s32 1, %s1189_s11 }
   0xb   : > { %p32_p0 = scmp.ge.s32.totalorder %s31_s15, 2  ;;  %s216_s17 = sadd.s32 1, %s1173_s29 }
   0xc   : > { %p226_p1 = scmp.ne.s32.totalorder %s1173_s29, %s1169_s28  ;;  %p227_p2 = scmp.eq.s32.totalorder %s867_s13, 3 }
   0xd   : > { %s1526_s15 = smov (%p32_p0, %s31_s15), 0  ;;  %s1528_s16 = smov (!%p32_p0, %s34_s16), %s1189_s11 }
   0xe   : > { %1511 = sst [smem:[#allocation11_spill]] %s1526_s15  ;;  %p1297_p3 = por %p227_p2, %p226_p1 }
   0xf   : > { %p232_p4 = scmp.ne.s32.totalorder %s1169_s28, %s1165_s27  ;;  %p36_p5 = scmp.ge.s32.totalorder %s1528_s16, 2 }
  0x10   : > { %p233_p6 = scmp.eq.s32.totalorder %s868_s14, 3  ;;  %p869_p7 = scmp.ge.s32.totalorder %s1193_s12, 1 }
  0x11   : > { %p240_p8 = scmp.lt.s32.totalorder %s1193_s12, 5  ;;  %s1530_s16 = smov (%p36_p5, %s1528_s16), 0 }
  0x12   : > { %1513 = sst [smem:[#allocation12_spill]] %s1530_s16  ;;  %p1307_p9 = por %p233_p6, %p232_p4 }
  0x13   : > { %p1311_p10 = pnand %p869_p7, %p240_p8  ;;  %s213_s21 = ssub.s32 %s1189_s11, %s1530_s16 }
  0x14   : > { %p214_p11 = scmp.eq.s32.totalorder %s213_s21, 0  ;;  %p980_p13 = scmp.eq.s32.totalorder %s867_s13, 0 }
  0x15   : > { %p972_p12 = pneg %p1311_p10  ;;  %s1516_s1 = sld [smem:[#allocation13_spill]] }
  0x16   : > { %s1323_s25 = scalar_select %p214_p11, %s1173_s29, %s216_s17  }
  0x17   : > { %s1195_s26 = smov [#allocation3]   ;;  %p973_p0 = pnand %p980_p13, %p972_p12 }
  0x18   : > { %s253_s14 = sshll.u32 %s1195_s26, 4  ;;  %s1196_s15 = smov 64   ;;  %s254_s14 = int_to_ptr.vmem [resolvable:$true] %s253_s14 }
  0x19   : > { %s1197_s10 = smov 4   ;;  %298 = sbr.rel (%p1311_p10) target bundleno = 826 (0x33a), region = 52 }
  0x1b   : > { %s251_s24 = sshll.u32 %s1516_s1, 4  ;;  %s252_s24 = int_to_ptr.hbm [resolvable:$true] %s251_s24 }
  0x1c   : > { %975 = dma.hbm_to_vmem [thread:$0]  (!%p973_p0), %s252_s24, 2048, %s254_s14, [#allocation4], %s1196_s15, %s1196_s15, %s1197_s10  }
  0x1e   : > { %1156 = dma.done.wait (%p980_p13), [#allocation4], 2048  }
  0x1f   : > { %1158 = vsyncadd (%p980_p13), [#allocation4], 4294965248  ;;  %s1505_s13 = sand.u32 1, %s1169_s28   ;;  %p336_p1 = scmp.lt.s32.totalorder %s1181_s9, 1 }
  0x20   : > { %s874_s17 = sshll.u32 %s1505_s13, 4  ;;  %p338_p2 = scmp.lt.s32.totalorder %s1177_s30, 1 }
  0x21   : > { %s337_s21 = scalar_select %p336_p1, %s1181_s9, 1 }
  0x22   : > { %s339_s22 = scalar_select %p338_p2, %s1177_s30, 1 }
  0x23   : > { %s875_s23 = sshll.u32 %s337_s21, 1  ;;  %s1337_s14 = scalar_lea.vmem [#allocation6], %s874_s17 }
  0x24   : > { %s341_s10 = sadd.s32 %s875_s23, %s339_s22  ;;  %p877_p4 = scmp.ne.s32.totalorder %s1177_s30, 0 }
  0x25   : > { %s876_s15 = sshll.u32 %s341_s10, 3 }
  0x26   : > { %s343_s26 = scalar_lea.vmem %s1495_s0, %s876_s15  ;;  %348 = sbr.rel (%p877_p4) target bundleno = 45 (0x2d), region = 60 }
  0x2b   : > { %v1198_v0 = vmov 0.0  }
  0x2c   : > { %349 = vst [vmem:[#allocation2] sm:$0xff] %v1198_v0 }
  0x2d PF: > { %s878_s13 = sshll.u32 %s1177_s30, 7  ;;  %v351_v9 = vld [vmem:[%s343_s26] sm:$0xff]  ;;  %p912_p5 = scmp.ne.s32.totalorder %s1177_s30, 1 }
  0x2e   : > { %s354_s1 = sshra.s32 %s878_s13, 3  ;;  %v352_v10 = vpack.c.bf16 %v351_v9, %v351_v9 }
  0x2f   : > { %s879_s16 = sshll.u32 %s354_s1, 2 }
  0x30   : > { %s357_s11 = scalar_lea.vmem [#allocation3], %s879_s16 }
  0x31   : > { %v943_v1 = vld [vmem:[%s357_s11 + $0x38] sm:$0xff]  ;;  %v942_v2 = vld [vmem:[%s357_s11 + $0x30] sm:$0xff]  ;;  %v941_v3 = vld [vmem:[%s357_s11 + $0x28] sm:$0xff] }
  0x32   : > { %422 = vmatpush.bf16.msra.mxu0 %v943_v1  ;;  %v940_v4 = vld [vmem:[%s357_s11 + $0x20] sm:$0xff]  ;;  %v939_v5 = vld [vmem:[%s357_s11 + $0x18] sm:$0xff]  ;;  %v938_v6 = vld [vmem:[%s357_s11 + $0x10] sm:$0xff] }
  0x33   : > { %v937_v7 = vld [vmem:[%s357_s11 + $0x8] sm:$0xff]  ;;  %v936_v8 = vld [vmem:[%s357_s11] sm:$0xff] }
  0x34   : > { %v353_v11 = vld [vmem:[#allocation2] sm:$0xff] }
  0x36   : > { %423 = vmatpush.bf16.msra.mxu0 %v942_v2 }
  0x3a   : > { %424 = vmatpush.bf16.msra.mxu0 %v941_v3 }
  0x3e   : > { %425 = vmatpush.bf16.msra.mxu0 %v940_v4 }
  0x42   : > { %426 = vmatpush.bf16.msra.mxu0 %v939_v5 }
  0x46   : > { %427 = vmatpush.bf16.msra.mxu0 %v938_v6 }
  0x4a   : > { %428 = vmatpush.bf16.msra.mxu0 %v937_v7 }
  0x4e   : > { %429 = vmatpush.bf16.msra.mxu0 %v936_v8 }
  0x51   : > { %430 = vmatmul.bf16.vlgmr.msra.gmra.mxu0 %v352_v10 }
  0xce   : > { %v431_v12 = vpop.f32.mrf.mxu0 }
  0xcf   : > { %v435_v13 = vadd.f32 %v431_v12, %v353_v11 }
  0xd1   : > { %436 = vst [vmem:[#allocation2] sm:$0xff] %v435_v13 }
  0xd2   : > { %440 = sbr.rel (%p912_p5) target bundleno = 810 (0x32a), region = 64 }
  0xd6   : > { %v433_v14 = vpop.f32.mrf.mxu0 }
  0xd7   : > { %vm464_vm0 = vcmask 1043456   ;;  %v944_v18 = vld [vmem:[%s1497_s2] sm:$0xff]  ;;  %vm457_vm1 = vcmask 64512   ;;  %v945_v19 = vld [vmem:[%s1497_s2 + $0x8] sm:$0xff]  ;;  %v1362_v24 = vld [vmem:[%s1499_s4 + $0x10] sm:$0xff]  ;;  %v1199_v39 = vmov 0  }
  0xd8   : > { %v441_v15 = vld [vmem:[#allocation2] sm:$0xff]  ;;  %v1353_v21 = vld [vmem:[%s1499_s4 + $0x8] sm:$0xff]  ;;  %v1371_v28 = vld [vmem:[%s1499_s4 + $0x18] sm:$0xff]  ;;  %1054 = vset.pattern.permute.xlu0 %v1199_v39  ;;  %1055 = vset.pattern.permute.xlu2 %v1199_v39  ;;  %vm519_vm2 = vcmask 261120  }
  0xd9   : > { %v442_v16 = vpack.c.bf16 %v441_v15, %v441_v15  ;;  %v1378_v30 = vld [vmem:[%s1499_s4] sm:$0xff]  ;;  %1056 = vset.pattern.permute.xlu1 %v1199_v39  ;;  %v516_v43 = vld [vmem:[%s1498_s3 + $0x8] sm:$0xff]  ;;  %v517_v47 = vld [vmem:[%s1498_s3 + $0x10] sm:$0xff] }
  0xda   : > { %v515_v42 = vld [vmem:[%s1498_s3] sm:$0xff]  ;;  %v518_v48 = vld [vmem:[%s1498_s3 + $0x18] sm:$0xff]  ;;  %v591_v53 = vld [vmem:[%s1502_s7 + $0x8] sm:$0xff] }
  0xdb   : > { %v466_v17 = vsel %vm464_vm0, %v442_v16, 0  ;;  %v714_v49 = vld [vmem:[%s1501_s6] sm:$0xff]  ;;  %v592_v63 = vld [vmem:[%s1502_s7 + $0x10] sm:$0xff]  ;;  %v717_v6 = vld [vmem:[%s1501_s6 + $0x18] sm:$0xff] }
  0xdc   : > { %475 = vmatpush.bf16.msra.mxu0 %v466_v17  ;;  %v590_v50 = vld [vmem:[%s1502_s7] sm:$0xff]  ;;  %v593_v11 = vld [vmem:[%s1502_s7 + $0x18] sm:$0xff] }
  0xdf   : > { %921 = vmatmul.msk.bf16.vlgmr.msra.gmra.mxu0 %vm457_vm1, %v944_v18 }
  0xef   : > { %922 = vmatmul.msk.bf16.gmra.mxu0 %vm457_vm1, %v945_v19 }
 0x15c   : > { %v1348_v20 = vpop.f32.mrf.mxu0 }
 0x15d   : > { %v491_v32 = vmul.f32 %v1378_v30, %v1348_v20 }
 0x15f   : > { %v503_v35 = vmul.f32 %v491_v32, %v491_v32 }
 0x164   : > { %v1355_v22 = vpop.f32.mrf.mxu0 }
 0x165   : > { %v492_v23 = vmul.f32 %v1353_v21, %v1355_v22 }
 0x167   : > { %497 = vadd.xlane.f32.xlu1 %v492_v23  ;;  %v504_v34 = vmul.f32 %v492_v23, %v492_v23 }
 0x16c   : > { %v1364_v25 = vpop.f32.mrf.mxu0 }
 0x16d   : > { %v493_v26 = vmul.f32 %v1362_v24, %v1364_v25 }
 0x16f   : > { %499 = vadd.xlane.f32.xlu0 %v493_v26  ;;  %v505_v27 = vmul.f32 %v493_v26, %v493_v26 }
 0x171   : > { %511 = vadd.xlane.f32.xlu2 %v505_v27 }
 0x174   : > { %v1373_v29 = vpop.f32.mrf.mxu0 }
 0x175   : > { %v494_v31 = vmul.f32 %v1371_v28, %v1373_v29 }
 0x177   : > { %501 = vadd.xlane.f32.xlu0 %v494_v31  ;;  %v506_v33 = vmul.f32 %v494_v31, %v494_v31 }
 0x179   : > { %495 = vadd.xlane.f32.xlu2 %v491_v32  ;;  %513 = vadd.xlane.f32.xlu1 %v506_v33 }
 0x17f   : > { %509 = vadd.xlane.f32.xlu0 %v504_v34 }
 0x181   : > { %507 = vadd.xlane.f32.xlu1 %v503_v35 }
 0x193   : > { %720 = vperm.xlu0 %1054, %v714_v49  }
 0x1da   : > { %v498_v37 = vpop.xlane.xlu1 %497 }
 0x1e2   : > { %v500_v36 = vpop.xlane.xlu0 %499 }
 0x1e4   : > { %v512_v38 = vpop.xlane.xlu2 %511 }
 0x1ea   : > { %v502_v40 = vpop.xlane.xlu0 %501 }
 0x1eb   : > { %544 = vmatpush.msra.mxu1 %v502_v40  ;;  %958 = vmatpush.msra.mxu3 %v502_v40 }
 0x1ec   : > { %v514_v41 = vpop.xlane.xlu1 %513  ;;  %v496_v44 = vpop.xlane.xlu2 %495 }
 0x1ed   : > { %545 = vmatpush.msra.mxu1 %v500_v36  ;;  %959 = vmatpush.msra.mxu3 %v500_v36 }
 0x1ee   : > { %962 = vmatpush.msra.mxu2 %v514_v41 }
 0x1ef   : > { %546 = vmatpush.msra.mxu1 %v498_v37  ;;  %960 = vmatpush.msra.mxu3 %v498_v37 }
 0x1f0   : > { %963 = vmatpush.msra.mxu2 %v512_v38 }
 0x1f1   : > { %547 = vmatpush.msra.mxu1 %v496_v44  ;;  %961 = vmatpush.msra.mxu3 %v496_v44 }
 0x1f2   : > { %923 = vmatmul.msk.f32.vlgmr.msra.gmra.mxu1 %vm519_vm2, %v515_v42  ;;  %924 = vmatmul.msk.f32.vlgmr.msra.gmra.mxu3 %vm519_vm2, %v516_v43  ;;  %v510_v45 = vpop.xlane.xlu0 %509 }
 0x1f3   : > { %573 = vmatpush.msrb.mxu1 %v514_v41  ;;  %964 = vmatpush.msra.mxu2 %v510_v45  ;;  %v682_v41 = vld [vmem:[%s1500_s5] sm:$0xff] }
 0x1f4   : > { %v508_v46 = vpop.xlane.xlu1 %507 }
 0x1f5   : > { %574 = vmatpush.msrb.mxu1 %v512_v38  ;;  %965 = vmatpush.msra.mxu2 %v508_v46 }
 0x1f6   : > { %928 = vmatmul.msk.f32.vlgmr.msra.gmra.mxu2 %vm519_vm2, %v516_v43 }
 0x1f7   : > { %575 = vmatpush.msrb.mxu1 %v510_v45 }
 0x1f9   : > { %576 = vmatpush.msrb.mxu1 %v508_v46 }
 0x1fa   : > { %925 = vmatmul.msk.f32.gmra.mxu3 %vm519_vm2, %v517_v47  ;;  %927 = vmatmul.msk.f32.vlgmr.msrb.gmra.mxu1 %vm519_vm2, %v515_v42 }
 0x1fe   : > { %929 = vmatmul.msk.f32.gmra.mxu2 %vm519_vm2, %v517_v47  ;;  %v683_v47 = vld [vmem:[%s1500_s5 + $0x8] sm:$0xff] }
 0x202   : > { %926 = vmatmul.msk.f32.gmra.mxu3 %vm519_vm2, %v518_v48 }
 0x206   : > { %930 = vmatmul.msk.f32.gmra.mxu2 %vm519_vm2, %v518_v48 }
 0x26f   : > { %v549_v51 = vpop.f32.mrf.mxu1 }
 0x270   : > { %v594_v52 = vmul.f32 %v590_v50, %v549_v51 }
 0x272   : > { %660 = vperm.xlu2 %1055, %v594_v52   ;;  %v602_v55 = vmul.f32 %v594_v52, %v594_v52 }
 0x275   : > { %v552_v54 = vpop.f32.mrf.mxu3 }
 0x276   : > { %v595_v56 = vmul.f32 %v591_v53, %v552_v54 }
 0x277   : > { %v578_v57 = vpop.f32.mrf.mxu1 }
 0x278   : > { %v603_v58 = vmul.f32 %v595_v56, %v595_v56  ;;  %v598_v59 = vmul.f32 %v590_v50, %v578_v57  ;;  %665 = vperm.xlu0 %1054, %v595_v56   ;;  %v684_v57 = vld [vmem:[%s1500_s5 + $0x10] sm:$0xff] }
 0x279   : > { %v581_v60 = vpop.f32.mrf.mxu2 }
 0x27a   : > { %v606_v61 = vsub.f32 %v598_v59, %v602_v55  ;;  %v599_v62 = vmul.f32 %v591_v53, %v581_v60 }
 0x27c   : > { %v610_v0 = vmax.f32 %v606_v61, 0.0  ;;  %v607_v1 = vsub.f32 %v599_v62, %v603_v58 }
 0x27d   : > { %v555_v2 = vpop.f32.mrf.mxu3 }
 0x27e   : > { %v614_v3 = vadd.f32 1e-05, %v610_v0  ;;  %v611_v4 = vmax.f32 %v607_v1, 0.0  ;;  %v596_v5 = vmul.f32 %v592_v63, %v555_v2  ;;  %v685_v0 = vld [vmem:[%s1500_s5 + $0x18] sm:$0xff]  ;;  %v715_v2 = vld [vmem:[%s1501_s6 + $0x8] sm:$0xff] }
 0x280   : > { %1057 = vrsqrt.f32 %v614_v3  ;;  %v615_v7 = vadd.f32 1e-05, %v611_v4  ;;  %v604_v8 = vmul.f32 %v596_v5, %v596_v5  ;;  %670 = vperm.xlu1 %1056, %v596_v5   ;;  %735 = vperm.xlu0 %1054, %v717_v6   ;;  %vm624_vm3 = vweird.f32 %v614_v3  ;;  %v716_v4 = vld [vmem:[%s1501_s6 + $0x10] sm:$0xff] }
 0x281   : > { %v584_v9 = vpop.f32.mrf.mxu2 }
 0x282   : > { %1059 = vrsqrt.f32 %v615_v7  ;;  %v600_v10 = vmul.f32 %v592_v63, %v584_v9  ;;  %vm634_vm7 = vweird.f32 %v615_v7 }
 0x284   : > { %v608_v12 = vsub.f32 %v600_v10, %v604_v8  ;;  %v721_v8 = vpop.permute.xlu0 %720 }
 0x285   : > { %v558_v13 = vpop.f32.mrf.mxu3 }
 0x286   : > { %v1058_v14 = vpop.eup %1057  ;;  %v612_v15 = vmax.f32 %v608_v12, 0.0  ;;  %v597_v16 = vmul.f32 %v593_v11, %v558_v13 }
 0x287   : > { %v619_v17 = vmul.f32 %v1058_v14, %v614_v3  ;;  %vm625_vm4 = vweird.f32 %v1058_v14 }
 0x288   : > { %v1060_v18 = vpop.eup %1059  ;;  %v616_v19 = vadd.f32 1e-05, %v612_v15  ;;  %v605_v23 = vmul.f32 %v597_v16, %v597_v16  ;;  %675 = vperm.xlu2 %1055, %v597_v16   ;;  %vm626_vm5 = vmor %vm624_vm3, %vm625_vm4 }
 0x289   : > { %v620_v26 = vmul.f32 %v1058_v14, %v619_v17  ;;  %v629_v27 = vmul.f32 %v1060_v18, %v615_v7  ;;  %v587_v31 = vpop.f32.mrf.mxu2  ;;  %vm635_vm6 = vweird.f32 %v1060_v18 }
 0x28a   : > { %1061 = vrsqrt.f32 %v616_v19  ;;  %v601_v32 = vmul.f32 %v593_v11, %v587_v31  ;;  %vm636_vm8 = vmor %vm634_vm7, %vm635_vm6  ;;  %vm644_vm10 = vweird.f32 %v616_v19 }
 0x28b   : > { %v621_v33 = vmul.f32 0.5, %v620_v26  ;;  %v630_v34 = vmul.f32 %v1060_v18, %v629_v27 }
 0x28c   : > { %v609_v35 = vsub.f32 %v601_v32, %v605_v23 }
 0x28d   : > { %v622_v36 = vsub.f32 1.5, %v621_v33  ;;  %v631_v37 = vmul.f32 0.5, %v630_v34 }
 0x28e   : > { %v613_v38 = vmax.f32 %v609_v35, 0.0 }
 0x28f   : > { %v632_v39 = vsub.f32 1.5, %v631_v37  ;;  %v623_v40 = vmul.f32 %v1058_v14, %v622_v36 }
 0x290   : > { %v1062_v42 = vpop.eup %1061  ;;  %v617_v43 = vadd.f32 1e-05, %v613_v38 }
 0x291   : > { %v639_v44 = vmul.f32 %v1062_v42, %v616_v19  ;;  %v627_v45 = vsel %vm626_vm5, %v1058_v14, %v623_v40  ;;  %v633_v46 = vmul.f32 %v1060_v18, %v632_v39  ;;  %vm645_vm9 = vweird.f32 %v1062_v42 }
 0x292   : > { %1063 = vrsqrt.f32 %v617_v43  ;;  %v686_v48 = vmul.f32 %v682_v41, %v627_v45  ;;  %vm646_vm11 = vmor %vm644_vm10, %vm645_vm9  ;;  %vm654_vm13 = vweird.f32 %v617_v43 }
 0x293   : > { %v640_v49 = vmul.f32 %v1062_v42, %v639_v44  ;;  %v637_v50 = vsel %vm636_vm8, %v1060_v18, %v633_v46 }
 0x294   : > { %692 = vperm.xlu2 %1055, %v686_v48   ;;  %v687_v51 = vmul.f32 %v683_v47, %v637_v50 }
 0x295   : > { %v641_v52 = vmul.f32 0.5, %v640_v49 }
 0x296   : > { %697 = vperm.xlu1 %1056, %v687_v51  }
 0x297   : > { %v642_v53 = vsub.f32 1.5, %v641_v52 }
 0x298   : > { %v1064_v54 = vpop.eup %1063 }
 0x299   : > { %v649_v55 = vmul.f32 %v1064_v54, %v617_v43  ;;  %v643_v56 = vmul.f32 %v1062_v42, %v642_v53  ;;  %vm655_vm12 = vweird.f32 %v1064_v54 }
 0x29a   : > { %vm656_vm14 = vmor %vm654_vm13, %vm655_vm12 }
 0x29b   : > { %v650_v58 = vmul.f32 %v1064_v54, %v649_v55  ;;  %v647_v59 = vsel %vm646_vm11, %v1062_v42, %v643_v56 }
 0x29c   : > { %v688_v60 = vmul.f32 %v684_v57, %v647_v59 }
 0x29d   : > { %v651_v61 = vmul.f32 0.5, %v650_v58 }
 0x29e   : > { %702 = vperm.xlu2 %1055, %v688_v60  }
 0x29f   : > { %v652_v62 = vsub.f32 1.5, %v651_v61 }
 0x2a1   : > { %v653_v63 = vmul.f32 %v1064_v54, %v652_v62 }
 0x2a3   : > { %v657_v1 = vsel %vm656_vm14, %v1064_v54, %v653_v63 }
 0x2a4   : > { %v689_v3 = vmul.f32 %v685_v0, %v657_v1 }
 0x2a6   : > { %707 = vperm.xlu1 %1056, %v689_v3   ;;  %725 = vperm.xlu2 %1055, %v715_v2  }
 0x2ae   : > { %730 = vperm.xlu1 %1056, %v716_v4  }
 0x2cc   : > { %v661_v5 = vpop.permute.xlu2 %660 }
 0x2cd   : > { %v678_v11 = vsub.f32 %v1348_v20, %v661_v5 }
 0x2e2   : > { %v676_v6 = vpop.permute.xlu2 %675 }
 0x2e3   : > { %v681_v20 = vsub.f32 %v1373_v29, %v676_v6 }
 0x2ea   : > { %v666_v13 = vpop.permute.xlu0 %665 }
 0x2eb   : > { %v679_v14 = vsub.f32 %v1355_v22, %v666_v13 }
 0x2ee   : > { %v693_v7 = vpop.permute.xlu2 %692 }
 0x2ef   : > { %v710_v12 = vmul.f32 %v693_v7, %v678_v11 }
 0x2f1   : > { %v738_v15 = vadd.f32 %v721_v8, %v710_v12 }
 0x2f2   : > { %v671_v9 = vpop.permute.xlu1 %670  ;;  %v736_v35 = vpop.permute.xlu0 %735 }
 0x2f3   : > { %v742_v19 = vmax.f32 %v738_v15, 0.0  ;;  %v680_v22 = vsub.f32 %v1364_v25, %v671_v9 }
 0x2f5   : > { %v746_v27 = vmul.f32 %v742_v19, %v1378_v30 }
 0x2f8   : > { %v703_v10 = vpop.permute.xlu2 %702 }
 0x2f9   : > { %v712_v37 = vmul.f32 %v703_v10, %v680_v22 }
 0x300   : > { %v726_v18 = vpop.permute.xlu2 %725 }
 0x308   : > { %v698_v16 = vpop.permute.xlu1 %697 }
 0x309   : > { %v711_v17 = vmul.f32 %v698_v16, %v679_v14 }
 0x30b   : > { %v739_v23 = vadd.f32 %v726_v18, %v711_v17 }
 0x30d   : > { %v743_v26 = vmax.f32 %v739_v23, 0.0 }
 0x30f   : > { %v747_v31 = vmul.f32 %v743_v26, %v1353_v21 }
 0x311   : > { %v950_v32 = vpack.c.bf16 %v747_v31, %v746_v27 }
 0x313   : > { %951 = vst [vmem:[%s1337_s14] sm:$0xff] %v950_v32  }
 0x318   : > { %v708_v33 = vpop.permute.xlu1 %707 }
 0x319   : > { %v713_v34 = vmul.f32 %v708_v33, %v681_v20 }
 0x31b   : > { %v741_v36 = vadd.f32 %v736_v35, %v713_v34 }
 0x31d   : > { %v745_v39 = vmax.f32 %v741_v36, 0.0 }
 0x31f   : > { %v749_v30 = vmul.f32 %v745_v39, %v1371_v28 }
 0x320   : > { %v731_v38 = vpop.permute.xlu1 %730 }
 0x321   : > { %v740_v40 = vadd.f32 %v731_v38, %v712_v37 }
 0x323   : > { %v744_v41 = vmax.f32 %v740_v40, 0.0 }
 0x325   : > { %v748_v21 = vmul.f32 %v744_v41, %v1362_v24 }
 0x327   : > { %v955_v42 = vpack.c.bf16 %v749_v30, %v748_v21 }
 0x329   : > { %957 = vst [vmem:[%s1337_s14 + $0x8] sm:$0xff] %v955_v42  }
 0x32a PF: > { %s946_s11 = sshll.u32 %s1181_s9, 4  ;;  %s771_s21 = sshll.u32 %s1337_s14, 4  ;;  %s772_s21 = int_to_ptr.vmem [resolvable:$true] %s771_s21 }
 0x32b   : > { %s770_s17 = scalar_lea.hbm %s1503_s8, %s946_s11  ;;  %s1517_s23 = sand.u32 1, %s1169_s28  }
 0x32c   : > { %s773_s22 = sshll.u32 %s770_s17, 4  ;;  %s759_s10 = scalar_lea.sflag [#allocation5], %s1517_s23  ;;  %s774_s22 = int_to_ptr.hbm [resolvable:$true] %s773_s22 }
 0x32d   : > { %s1109_s15 = sshra.s32 %s774_s22, 4  ;;  %s1115_s9 = scalar_lea.hbm %s1503_s8, 32  ;;  %s1110_s15 = int_to_ptr.hbm [resolvable:$true] %s1109_s15 }
 0x32e   : > { %s1111_s20 = scalar_lea.hbm %s1110_s15, 16  ;;  %p1116_p10 = scmp.lt.s32.totalorder %s1110_s15, %s1503_s8 }
 0x32f   : > { %p1112_p6 = scmp.ne.s32.totalorder %s1110_s15, %s1111_s20  ;;  %p1117_p11 = scmp.lt.s32.totalorder %s1115_s9, %s1111_s20 }
 0x331   : > { %p1113_p7 = pnand %p1112_p6, %p1297_p3  ;;  %p1118_p12 = por %p1117_p11, %p1116_p10 }
 0x333   : > { %p1114_p8 = pneg %p1113_p7 }
 0x335   : > { %p1119_p13 = pnand %p1118_p12, %p1114_p8 }
 0x337   : > { %1122 = shalt.err (!%p1119_p13)
}
 0x338   : > { %s1200_s14 = smov 64   ;;  %s1201_s11 = smov 4  }
 0x339   : > { %970 = dma.vmem_to_hbm [thread:$0]  (%p1297_p3), %s772_s21, 256, %s774_s22, %s759_s10, %s1200_s14, %s1200_s14, %s1201_s11  }
 0x33a PF: > { %p982_p0 = scmp.ge.s32.totalorder %s1193_s12, 2  ;;  %s788_s13 = sand.u32 1, %s1165_s27  }
 0x33b   : > { %s789_s30 = scalar_lea.sflag [#allocation5], %s788_s13 }
 0x33c   : > { %p977_p1 = pnand %p982_p0, %p1307_p9 }
 0x33e   : > { %p978_p2 = pneg %p977_p1 }
 0x340   : > { %1160 = dma.done.wait (%p978_p2), %s789_s30, 256  }
 0x341   : > { %1162 = vsyncadd (%p978_p2), %s789_s30, 4294967040  ;;  %s22_s12 = sadd.s32 1, %s1193_s12   ;;  %s1518_s30 = sld [smem:[#allocation9_spill]] }
 0x342   : > { %p19_p4 = scmp.ge.s32.totalorder %s22_s12, 6   ;;  %s1519_s9 = sld [smem:[#allocation10_spill]] }
 0x343   : > { %s1520_s10 = sld [smem:[#allocation11_spill]]  ;;  %s1522_s27 = smov %s1169_s28 }
 0x344   : > { %s1521_s11 = sld [smem:[#allocation12_spill]]  ;;  %s1523_s28 = smov %s1173_s29 }
 0x345   : > { %s1524_s29 = smov %s1323_s25  ;;  %21 = sbr.rel (!%p19_p4) target bundleno = 8 (0x8), region = 101 }
 0x34a   :  { %795 = vsyncpa [#allocation4], 1 }
 0x34b   :  { %797 = vsyncpa [#allocation4 + $0x1], 1 }
 0x34c   :  { %798 = vsyncpa [#allocation5], 1 }
 0x34d   :  { %800 = vsyncpa [#allocation5 + $0x1], 1 }

</bundles_post_ra>
